<compile_context>
chip_gen: v5e
topology: v5e:2x2
jax: 0.10.0
libtpu: 0.0.40
codegen_flags: <defaults>
</compile_context>

<pallas_src>
import functools

import jax
import jax.numpy as jnp
from jax import lax
from jax.experimental import pallas as pl
from jax.experimental.pallas import tpu as pltpu


def soft_q_kernel(x_ref, w1_ref, w2_ref, w3_ref, b12_ref, b3_ref, o_ref):
    # x_ref  : (TB, D_in) state tile, batch-major exactly as stored in HBM
    # w1_ref : (H, D_in)  PyTorch layout (out, in) — used untransposed
    # w2_ref : (H, H)
    # w3_ref : (H, 1)     logits weight as a column
    # b12_ref: (H, 2)     [:, 0] = b1, [:, 1] = b2
    # b3_ref : (1,)       scalar bias in SMEM
    # o_ref  : (1, TB)
    x = x_ref[...]
    b1 = b12_ref[:, 0:1]                      # (H, 1) — broadcasts over lanes
    b2 = b12_ref[:, 1:2]

    # h1 = W1 @ x^T: contract the d_in axes of both operands so the batch lands
    # on the lane axis -> (H, TB).  The implicit (TB, d_in) -> (d_in, TB) flip
    # is a handful of XLU vxpose ops hidden under the input DMA.
    h1 = lax.dot_general(
        w1_ref[...], x,
        dimension_numbers=(((1,), (1,)), ((), ())),
        preferred_element_type=jnp.float32) + b1
    h1 = jnp.maximum(h1, 0.0)                 # (H, TB)
    h2 = jnp.dot(w2_ref[...], h1, preferred_element_type=jnp.float32) + b2
    h2 = jnp.maximum(h2, 0.0)                 # (H, TB)
    # Final H->1 projection as VPU multiply + sublane reduce: keeps the MXU out
    # of an M=1 matmul and yields a lane-dense (1, TB) result.
    q = jnp.sum(h2 * w3_ref[...], axis=0, keepdims=True) + b3_ref[0]
    o_ref[...] = q.astype(o_ref.dtype)


def pack_params(params):
    """One-time re-layout of PyTorch-style params for the kernel (call once)."""
    w1, b1, w2, b2, w3, b3 = params
    hidden = w1.shape[0]
    b12 = jnp.stack([b1, b2], axis=1).astype(jnp.float32)    # (H, 2)
    w3_col = w3.reshape(hidden, 1).astype(jnp.float32)       # (H, 1)
    b3_s = b3.reshape(1).astype(jnp.float32)                 # (1,)
    # TODO(synk): for compute-bound hidden sizes (H >= 512) cast w1/w2 to bf16
    # here (keep preferred_element_type=f32 accumulation in the kernel).
    return (w1.astype(jnp.float32), w2.astype(jnp.float32), w3_col, b12, b3_s)


@functools.lru_cache(maxsize=None)
def _vmem_limit_bytes() -> int:
    """Per-generation VMEM budget: physical capacity minus headroom, capped.

    v5e/v6e (128 MiB physical) -> ~100 MiB; v7x (64 MiB physical) -> ~52 MiB.
    Falls back to a conservative value if the query is unavailable.
    """
    cap = None
    try:
        info = pltpu.get_tpu_info()
        for name in ("vmem_capacity_bytes", "vmem_size_bytes", "vmem_bytes"):
            val = getattr(info, name, None)
            if val:
                cap = int(val)
                break
    except Exception:
        cap = None
    if not cap:
        cap = 64 * 1024 * 1024            # conservative fallback (v7x physical)
    return int(max(16 * 1024 * 1024,
                   min(cap - 12 * 1024 * 1024, 100 * 1024 * 1024)))


@functools.partial(jax.jit, static_argnames=("tb",))
def soft_q_forward(state, packed, *, tb=512):
    """state: (B, action_dim + n_inputs) float32. Returns (B, 1) float32."""
    w1, w2, w3_col, b12, b3 = packed
    batch, d_in = state.shape
    hidden = w1.shape[0]

    if pl.cdiv(batch, tb) <= 4:
        # Small/medium batch: one grid step over the whole (unpadded) batch.
        # Removes per-step overhead and dead padded lanes; the grid is a serial
        # loop on v5e/v6e anyway, so splitting small batches buys nothing.
        nb, tile_b, out_w, x_in = 1, batch, batch, state
    else:
        # Large batch: tb-wide tiles (lane-dense output DMA; ("parallel",)
        # lets v7x split tiles across its two TensorCores).
        nb = pl.cdiv(batch, tb)
        tile_b = tb
        out_w = nb * tb
        # Pad only the remainder tile case; this is a small state-only copy and
        # keeps every tile fully in-bounds (robust on all generations).
        x_in = state if out_w == batch else jnp.pad(
            state, ((0, out_w - batch), (0, 0)))

    # Review item (v7x): grid-invariant operands (constant index_map) are only
    # fetched once, so default double-buffering just burns VMEM.  Request
    # single buffering once their double-buffered footprint is big enough to
    # matter (large hidden); at tiny hidden stay on the default pipeline config.
    invariant_kwargs = {}
    if hasattr(pl, "Buffered") and hidden * (hidden + d_in) * 4 >= (1 << 20):
        invariant_kwargs = dict(pipeline_mode=pl.Buffered(1))

    q_t = pl.pallas_call(
        soft_q_kernel,
        out_shape=jax.ShapeDtypeStruct((1, out_w), jnp.float32),
        grid=(nb,),
        in_specs=[
            pl.BlockSpec((tile_b, d_in), lambda i: (i, 0)),        # state tile
            pl.BlockSpec((hidden, d_in), lambda i: (0, 0),         # W1 (resident)
                         **invariant_kwargs),
            pl.BlockSpec((hidden, hidden), lambda i: (0, 0),       # W2 (resident)
                         **invariant_kwargs),
            pl.BlockSpec((hidden, 1), lambda i: (0, 0),            # w3 column
                         **invariant_kwargs),
            pl.BlockSpec((hidden, 2), lambda i: (0, 0),            # packed b1/b2
                         **invariant_kwargs),
            pl.BlockSpec(memory_space=pltpu.MemorySpace.SMEM),     # b3 scalar
        ],
        out_specs=pl.BlockSpec((1, tile_b), lambda i: (0, i)),
        compiler_params=pltpu.CompilerParams(
            dimension_semantics=("parallel",),      # v7x: shard tiles over 2 TCs
            vmem_limit_bytes=_vmem_limit_bytes(),   # per-generation budget
        ),
    )(x_in, w1, w2, w3_col, b12, b3)

    return q_t[:, :batch].T                          # (B, 1)


def init_params(key, n_inputs, action_dim, hidden_dim, init_w):
    """Deterministic init mimicking torch.nn.Linear defaults + the
    uniform(-init_w, init_w) override on the logits layer."""
    d_in = action_dim + n_inputs
    k1, k2, k3, k4, k5, k6 = jax.random.split(key, 6)

    def linear_init(kw, kb, fan_in, fan_out):
        bound = 1.0 / jnp.sqrt(fan_in)
        w = jax.random.uniform(kw, (fan_out, fan_in), jnp.float32, -bound, bound)
        b = jax.random.uniform(kb, (fan_out,), jnp.float32, -bound, bound)
        return w, b

    w1, b1 = linear_init(k1, k2, d_in, hidden_dim)
    w2, b2 = linear_init(k3, k4, hidden_dim, hidden_dim)
    w3 = jax.random.uniform(k5, (1, hidden_dim), jnp.float32, -init_w, init_w)
    b3 = jax.random.uniform(k6, (1,), jnp.float32, -init_w, init_w)
    return (w1, b1, w2, b2, w3, b3)


def reference_forward(state, params):
    w1, b1, w2, b2, w3, b3 = params
    h1 = jnp.maximum(state @ w1.T + b1, 0.0)
    h2 = jnp.maximum(h1 @ w2.T + b2, 0.0)
    return h2 @ w3.T + b3


if __name__ == "__main__":
    n_inputs, action_dim, hidden_dim, init_w = 24, 8, 32, 3e-3
    batch = 4

    key = jax.random.PRNGKey(0)
    k_params, k_state = jax.random.split(key)
    params = init_params(k_params, n_inputs, action_dim, hidden_dim, init_w)
    packed = pack_params(params)   # one-time re-layout, outside the per-call path
    state = jax.random.normal(k_state, (batch, action_dim + n_inputs), jnp.float32)

    q = jax.block_until_ready(soft_q_forward(state, packed))
    q_ref = reference_forward(state, params)
    assert q.shape == (batch, 1)
    assert jnp.allclose(q, q_ref, atol=1e-5, rtol=1e-5)

    # Collapsed single-step path with a batch that is not a multiple of 8/128
    # (no pad, no transpose, one grid step).
    state_med = jax.random.normal(
        jax.random.PRNGKey(1), (300, action_dim + n_inputs), jnp.float32)
    q_med = jax.block_until_ready(soft_q_forward(state_med, packed))
    assert q_med.shape == (300, 1)
    assert jnp.allclose(q_med, reference_forward(state_med, params),
                        atol=1e-5, rtol=1e-5)

    # Multi-tile pipelined path: batch > 4*tb -> 512-wide tiles with padding
    # of the remainder tile (2100 -> 5 tiles of 512).
    state_big = jax.random.normal(
        jax.random.PRNGKey(2), (2100, action_dim + n_inputs), jnp.float32)
    q_big = jax.block_until_ready(soft_q_forward(state_big, packed))
    assert q_big.shape == (2100, 1)
    assert jnp.allclose(q_big, reference_forward(state_big, params),
                        atol=1e-5, rtol=1e-5)

    print("KERNEL_OK")
</pallas_src>

<mosaic_0001>
module attributes {stable_mosaic.version = 11 : i64} {
  func.func @soft_q_kernel(%arg0: i32, %arg1: memref<4x32xf32, #tpu.memory_space<vmem>>, %arg2: memref<32x32xf32, #tpu.memory_space<vmem>>, %arg3: memref<32x32xf32, #tpu.memory_space<vmem>>, %arg4: memref<32x1xf32, #tpu.memory_space<vmem>>, %arg5: memref<32x2xf32, #tpu.memory_space<vmem>>, %arg6: memref<1xf32, #tpu.memory_space<smem>>, %arg7: memref<1x4xf32, #tpu.memory_space<vmem>>) attributes {dimension_semantics = [#tpu.dimension_semantics<parallel>], iteration_bounds = array<i64: 1>, scalar_prefetch = 0 : i64, scratch_operands = 0 : i64, tpu.core_type = #tpu.core_type<tc>, window_params = [{transform_indices = @transform_0, window_bounds = array<i64: 4, 32>}, {pipeline_mode = #tpu.pipeline_mode<synchronous>, transform_indices = @transform_1, window_bounds = array<i64: 32, 32>}, {pipeline_mode = #tpu.pipeline_mode<synchronous>, transform_indices = @transform_2, window_bounds = array<i64: 32, 32>}, {pipeline_mode = #tpu.pipeline_mode<synchronous>, transform_indices = @transform_3, window_bounds = array<i64: 32, 1>}, {pipeline_mode = #tpu.pipeline_mode<synchronous>, transform_indices = @transform_4, window_bounds = array<i64: 32, 2>}, {transform_indices = @transform_5, window_bounds = array<i64: 1>}, {transform_indices = @transform_6, window_bounds = array<i64: 1, 4>}]} {
    %c0 = arith.constant 0 : index
    %c0_0 = arith.constant 0 : index
    %0 = vector.load %arg1[%c0, %c0_0] : memref<4x32xf32, #tpu.memory_space<vmem>>, vector<4x32xf32>
    %c0_1 = arith.constant 0 : index
    %c0_2 = arith.constant 0 : index
    %1 = vector.load %arg5[%c0_1, %c0_2] : memref<32x2xf32, #tpu.memory_space<vmem>>, vector<32x1xf32>
    %c0_3 = arith.constant 0 : index
    %c1 = arith.constant 1 : index
    %2 = vector.load %arg5[%c0_3, %c1] : memref<32x2xf32, #tpu.memory_space<vmem>>, vector<32x1xf32>
    %c0_4 = arith.constant 0 : index
    %c0_5 = arith.constant 0 : index
    %3 = vector.load %arg2[%c0_4, %c0_5] : memref<32x32xf32, #tpu.memory_space<vmem>>, vector<32x32xf32>
    %cst = arith.constant dense<0.000000e+00> : vector<32x4xf32>
    %4 = tpu.matmul %3, %0, %cst {dimension_numbers = #tpu.dot_dimension_numbers<[1], [1], [0], [0], [0, 0, 1, 0], [], []>} : vector<32x32xf32>, vector<4x32xf32>, vector<32x4xf32> -> vector<32x4xf32>
    %5 = vector.broadcast %1 : vector<32x1xf32> to vector<32x4xf32>
    %6 = arith.addf %4, %5 : vector<32x4xf32>
    %cst_6 = arith.constant 0.000000e+00 : f32
    %7 = vector.broadcast %cst_6 : f32 to vector<32x4xf32>
    %8 = arith.maximumf %6, %7 : vector<32x4xf32>
    %c0_7 = arith.constant 0 : index
    %c0_8 = arith.constant 0 : index
    %9 = vector.load %arg3[%c0_7, %c0_8] : memref<32x32xf32, #tpu.memory_space<vmem>>, vector<32x32xf32>
    %cst_9 = arith.constant dense<0.000000e+00> : vector<32x4xf32>
    %10 = tpu.matmul %9, %8, %cst_9 {dimension_numbers = #tpu.dot_dimension_numbers<[1], [0], [0], [1], [0, 0, 1, 1], [], []>} : vector<32x32xf32>, vector<32x4xf32>, vector<32x4xf32> -> vector<32x4xf32>
    %11 = vector.broadcast %2 : vector<32x1xf32> to vector<32x4xf32>
    %12 = arith.addf %10, %11 : vector<32x4xf32>
    %cst_10 = arith.constant 0.000000e+00 : f32
    %13 = vector.broadcast %cst_10 : f32 to vector<32x4xf32>
    %14 = arith.maximumf %12, %13 : vector<32x4xf32>
    %c0_11 = arith.constant 0 : index
    %c0_12 = arith.constant 0 : index
    %15 = vector.load %arg4[%c0_11, %c0_12] : memref<32x1xf32, #tpu.memory_space<vmem>>, vector<32x1xf32>
    %16 = vector.broadcast %15 : vector<32x1xf32> to vector<32x4xf32>
    %17 = arith.mulf %14, %16 : vector<32x4xf32>
    %cst_13 = arith.constant dense<0.000000e+00> : vector<4xf32>
    %18 = vector.multi_reduction <add>, %17, %cst_13 [0] : vector<32x4xf32> to vector<4xf32>
    %19 = vector.shape_cast %18 : vector<4xf32> to vector<1x4xf32>
    %c0_14 = arith.constant 0 : index
    %20 = memref.load %arg6[%c0_14] : memref<1xf32, #tpu.memory_space<smem>>
    %21 = vector.broadcast %20 : f32 to vector<1x4xf32>
    %22 = arith.addf %19, %21 : vector<1x4xf32>
    %c0_15 = arith.constant 0 : index
    %c0_16 = arith.constant 0 : index
    %23 = vector.load %arg7[%c0_15, %c0_16] : memref<1x4xf32, #tpu.memory_space<vmem>>, vector<1x4xf32>
    tpu.vector_store %arg7[%c0_15, %c0_16], %22 {strides = array<i32>} : memref<1x4xf32, #tpu.memory_space<vmem>>, vector<1x4xf32>,
    return
  }
  func.func @transform_0(%arg0: i32) -> (i32, i32) {
    %c0_i32 = arith.constant 0 : i32
    %c0_i32_0 = arith.constant 0 : i32
    return %arg0, %c0_i32 : i32, i32
  }
  func.func @transform_1(%arg0: i32) -> (i32, i32) {
    %c0_i32 = arith.constant 0 : i32
    %c0_i32_0 = arith.constant 0 : i32
    %c0_i32_1 = arith.constant 0 : i32
    return %c0_i32, %c0_i32_0 : i32, i32
  }
  func.func @transform_2(%arg0: i32) -> (i32, i32) {
    %c0_i32 = arith.constant 0 : i32
    %c0_i32_0 = arith.constant 0 : i32
    %c0_i32_1 = arith.constant 0 : i32
    return %c0_i32, %c0_i32_0 : i32, i32
  }
  func.func @transform_3(%arg0: i32) -> (i32, i32) {
    %c0_i32 = arith.constant 0 : i32
    %c0_i32_0 = arith.constant 0 : i32
    %c0_i32_1 = arith.constant 0 : i32
    return %c0_i32, %c0_i32_0 : i32, i32
  }
  func.func @transform_4(%arg0: i32) -> (i32, i32) {
    %c0_i32 = arith.constant 0 : i32
    %c0_i32_0 = arith.constant 0 : i32
    %c0_i32_1 = arith.constant 0 : i32
    return %c0_i32, %c0_i32_0 : i32, i32
  }
  func.func @transform_5(%arg0: i32) -> i32 {
    %c0_i32 = arith.constant 0 : i32
    %c0_i32_0 = arith.constant 0 : i32
    return %c0_i32 : i32
  }
  func.func @transform_6(%arg0: i32) -> (i32, i32) {
    %c0_i32 = arith.constant 0 : i32
    %c0_i32_0 = arith.constant 0 : i32
    return %c0_i32, %arg0 : i32, i32
  }
}

</mosaic_0001>

<bundles_post_ra>
// kernel: soft_q_forward.1
= control target key start
LH: loop header
LB: loop body
LE: loop exit
PB: predicated region body
PF: predicated region fallthrough
CT: control target
= control target key end

     0   :  { %12 = vsyncpa [#allocation4], 0  ;;  %s430_s0 = inlined_call_operand.hbm [shape: f32[4,32], index: 0, kind: input, shape index: {}]   ;;  %s431_s1 = inlined_call_operand.vmem [shape: f32[32,32], index: 1, kind: input, shape index: {}]   ;;  %s432_s2 = inlined_call_operand.vmem [shape: f32[32,32], index: 2, kind: input, shape index: {}]   ;;  %s433_s3 = inlined_call_operand.vmem [shape: f32[32,1], index: 3, kind: input, shape index: {}]   ;;  %s434_s4 = inlined_call_operand.vmem [shape: f32[32,2], index: 4, kind: input, shape index: {}]   ;;  %s435_s5 = inlined_call_operand.<no memory space> [shape: f32[1], index: 5, kind: input, shape index: {}]   ;;  %s436_s6 = inlined_call_operand.hbm [shape: f32[1,4], index: 6, kind: output, shape index: {}]  }
   0x1   :  { %13 = vsyncpa [#allocation5], 0  ;;  %s19_s23 = sshll.u32 %s430_s0, 4  ;;  %s324_s24 = smov [#allocation3]   ;;  %s20_s23 = int_to_ptr.hbm [resolvable:$true] %s19_s23 }
   0x2   :  { %s21_s25 = sshll.u32 %s324_s24, 4  ;;  %s22_s25 = int_to_ptr.vmem [resolvable:$true] %s21_s25 }
   0x3   :  { %24 = dma.hbm_to_vmem [thread:$0]  %s20_s23, 64, %s22_s25, [#allocation4]  }
   0x4   :  { %320 = dma.done.wait [#allocation4], 64  }
   0x5   :  { %321 = vsyncadd [#allocation4], 4294967232  ;;  %v325_v0 = vmov 0   ;;  %vm68_vm0 = vcmask 261120   ;;  %v39_v1 = vld [vmem:[#allocation3] sm:$0xf] }
   0x6   :  { %265 = vset.pattern.permute.xlu1 %v325_v0  ;;  %264 = vset.pattern.permute.xlu0 %v325_v0  ;;  %v45_v2 = vld [vmem:[%s431_s1 + $0x8] sm:$0xff]  ;;  %v43_v3 = vld [vmem:[%s434_s4 + $0x18] sm:$0xff]  ;;  %v44_v5 = vld [vmem:[%s431_s1] sm:$0xff]  ;;  %v326_v12 = vmov 1   ;;  %vm210_vm1 = vcmask 31744   ;;  %s327_s30 = smov [#allocation6]  }
   0x7   :  { %255 = vmatpush.xpose.msk.msra.mxu3 %vm68_vm0, %v39_v1  ;;  %v41_v4 = vld [vmem:[%s434_s4 + $0x8] sm:$0xff]  ;;  %246 = vmatpush.xpose.msk.msra.mxu0 %vm68_vm0, %v39_v1  ;;  %v42_v6 = vld [vmem:[%s434_s4 + $0x10] sm:$0xff]  ;;  %v40_v7 = vld [vmem:[%s434_s4] sm:$0xff]  ;;  %s234_s7 = sshll.u32 %s327_s30, 4  ;;  %s236_s10 = sshll.u32 %s436_s6, 4  ;;  %vm227_vm2 = vcmask 24576   ;;  %s235_s7 = int_to_ptr.vmem [resolvable:$true] %s234_s7  ;;  %s237_s10 = int_to_ptr.hbm [resolvable:$true] %s236_s10 }
   0x8   :  { %65 = vperm.xlu0 %264, %v43_v3   ;;  %55 = vperm.xlu1 %265, %v41_v4   ;;  %v46_v8 = vld [vmem:[%s431_s1 + $0x10] sm:$0xff]  ;;  %v47_v9 = vld [vmem:[%s431_s1 + $0x18] sm:$0xff]  ;;  %v183_v15 = vld [vmem:[%s433_s3 + $0x8] sm:$0xff] }
   0x9   :  { %266 = vset.pattern.permute.xlu2 %v326_v12  ;;  %v185_v17 = vld [vmem:[%s433_s3 + $0x18] sm:$0xff]  ;;  %v182_v28 = vld [vmem:[%s433_s3] sm:$0xff]  ;;  %v119_v31 = vld [vmem:[%s432_s2 + $0x10] sm:$0xff] }
   0xa   :  { %248 = vmatmul.msk.f32.vlgmr.msra.gmra.mxu3 %vm68_vm0, %v45_v2  ;;  %247 = vmatmul.msk.f32.vlgmr.msra.gmra.mxu0 %vm68_vm0, %v44_v5  ;;  %v117_v30 = vld [vmem:[%s432_s2] sm:$0xff]  ;;  %v184_v32 = vld [vmem:[%s433_s3 + $0x10] sm:$0xff]  ;;  %v118_v33 = vld [vmem:[%s432_s2 + $0x8] sm:$0xff] }
   0xb   :  { %122 = vperm.xlu2 %266, %v40_v7   ;;  %v120_v34 = vld [vmem:[%s432_s2 + $0x18] sm:$0xff] }
  0x10   :  { %60 = vperm.xlu0 %264, %v42_v6   ;;  %50 = vperm.xlu1 %265, %v40_v7   ;;  %v225_v7 = vstv %s435_s5 }
  0x12   :  { %249 = vmatmul.msk.f32.gmra.mxu3 %vm68_vm0, %v46_v8 }
  0x13   :  { %126 = vperm.xlu2 %266, %v41_v4  }
  0x18   :  { %268 = vset.pattern.permute.xlu1 %v326_v12  ;;  %267 = vset.pattern.permute.xlu0 %v326_v12 }
  0x19   :  { %134 = vperm.xlu1 %268, %v43_v3   ;;  %130 = vperm.xlu0 %267, %v42_v6  }
  0x1a   :  { %250 = vmatmul.msk.f32.gmra.mxu3 %vm68_vm0, %v47_v9 }
  0x1b   :  { %269 = vset.pattern.permute.xlu2 %v325_v0 }
  0x1c   :  { %188 = vperm.xlu2 %269, %v182_v28  }
  0x21   :  { %270 = vset.pattern.permute.xlu1 %v325_v0  ;;  %271 = vset.pattern.permute.xlu0 %v325_v0 }
  0x22   :  { %193 = vperm.xlu1 %270, %v183_v15   ;;  %203 = vperm.xlu0 %271, %v185_v17  }
  0x24   :  { %198 = vperm.xlu2 %269, %v184_v32  }
  0x65   :  { %v123_v35 = vpop.permute.xlu2 %122 }
  0x6d   :  { %v127_v36 = vpop.permute.xlu2 %126 }
  0x76   :  { %v189_v40 = vpop.permute.xlu2 %188 }
  0x7a   :  { %v66_v11 = vpop.permute.xlu0 %65  ;;  %v56_v14 = vpop.permute.xlu1 %55 }
  0x7e   :  { %v199_v52 = vpop.permute.xlu2 %198 }
  0x82   :  { %v61_v16 = vpop.permute.xlu0 %60  ;;  %v51_v21 = vpop.permute.xlu1 %50 }
  0x87   :  { %v101_v22 = vpop.f32.mrf.mxu0 }
  0x88   :  { %v102_v26 = vadd.f32 %v101_v22, %v51_v21 }
  0x8a   :  { %v113_v29 = vmax.f32 %v102_v26, 0.0 }
  0x8b   :  { %v135_v38 = vpop.permute.xlu1 %134  ;;  %v131_v41 = vpop.permute.xlu0 %130 }
  0x8d   :  { %v104_v10 = vpop.f32.mrf.mxu3 }
  0x8e   :  { %v105_v23 = vadd.f32 %v104_v10, %v56_v14 }
  0x90   :  { %v114_v27 = vmax.f32 %v105_v23, 0.0 }
  0x94   :  { %v194_v47 = vpop.permute.xlu1 %193  ;;  %v204_v59 = vpop.permute.xlu0 %203 }
  0x95   :  { %v107_v13 = vpop.f32.mrf.mxu3 }
  0x96   :  { %v108_v19 = vadd.f32 %v107_v13, %v61_v16 }
  0x98   :  { %v115_v25 = vmax.f32 %v108_v19, 0.0 }
  0x9d   :  { %v110_v18 = vpop.f32.mrf.mxu3 }
  0x9e   :  { %v111_v20 = vadd.f32 %v110_v18, %v66_v11 }
  0xa0   :  { %v116_v24 = vmax.f32 %v111_v20, 0.0 }
  0xa2   :  { %161 = vmatpush.msra.mxu1 %v116_v24  ;;  %256 = vmatpush.msra.mxu2 %v116_v24 }
  0xa4   :  { %162 = vmatpush.msra.mxu1 %v115_v25  ;;  %257 = vmatpush.msra.mxu2 %v115_v25 }
  0xa6   :  { %163 = vmatpush.msra.mxu1 %v114_v27  ;;  %258 = vmatpush.msra.mxu2 %v114_v27 }
  0xa8   :  { %164 = vmatpush.msra.mxu1 %v113_v29  ;;  %259 = vmatpush.msra.mxu2 %v113_v29 }
  0xa9   :  { %251 = vmatmul.msk.f32.vlgmr.msra.gmra.mxu1 %vm68_vm0, %v117_v30  ;;  %253 = vmatmul.msk.f32.vlgmr.msra.gmra.mxu2 %vm68_vm0, %v119_v31 }
  0xb1   :  { %252 = vmatmul.msk.f32.gmra.mxu1 %vm68_vm0, %v118_v33  ;;  %254 = vmatmul.msk.f32.gmra.mxu2 %vm68_vm0, %v120_v34 }
 0x126   :  { %v166_v37 = vpop.f32.mrf.mxu1 }
 0x127   :  { %v167_v39 = vadd.f32 %v166_v37, %v123_v35 }
 0x129   :  { %v178_v43 = vmax.f32 %v167_v39, 0.0 }
 0x12b   :  { %v206_v48 = vmul.f32 %v189_v40, %v178_v43 }
 0x12c   :  { %v172_v42 = vpop.f32.mrf.mxu2 }
 0x12d   :  { %v173_v44 = vadd.f32 %v172_v42, %v131_v41  ;;  %v211_v55 = vsel %vm210_vm1, %v206_v48, 0.0 }
 0x12e   :  { %v169_v45 = vpop.f32.mrf.mxu1 }
 0x12f   :  { %v170_v46 = vadd.f32 %v169_v45, %v127_v36  ;;  %v180_v49 = vmax.f32 %v173_v44, 0.0 }
 0x131   :  { %v179_v50 = vmax.f32 %v170_v46, 0.0  ;;  %v208_v54 = vmul.f32 %v199_v52, %v180_v49 }
 0x133   :  { %v207_v51 = vmul.f32 %v194_v47, %v179_v50  ;;  %v214_v61 = vsel %vm210_vm1, %v208_v54, 0.0 }
 0x134   :  { %v175_v53 = vpop.f32.mrf.mxu2 }
 0x135   :  { %v212_v56 = vsel %vm210_vm1, %v207_v51, 0.0  ;;  %v176_v57 = vadd.f32 %v175_v53, %v135_v38 }
 0x136   :  { %v213_v58 = vadd.f32 %v212_v56, %v211_v55 }
 0x137   :  { %v181_v60 = vmax.f32 %v176_v57, 0.0 }
 0x138   :  { %v215_v63 = vadd.f32 %v214_v61, %v213_v58 }
 0x139   :  { %v209_v62 = vmul.f32 %v204_v59, %v181_v60 }
 0x13b   :  { %v216_v0 = vsel %vm210_vm1, %v209_v62, 0.0 }
 0x13c   :  { %v217_v1 = vadd.f32 %v216_v0, %v215_v63 }
 0x13e   :  { %v218_v2 = vrot.slane %v217_v1, 4 }
 0x140   :  { %v219_v3 = vadd.f32 %v218_v2, %v217_v1 }
 0x142   :  { %v220_v4 = vrot.slane %v219_v3, 2 }
 0x144   :  { %v221_v5 = vadd.f32 %v220_v4, %v219_v3 }
 0x146   :  { %v222_v6 = vrot.slane %v221_v5, 1 }
 0x148   :  { %v223_v8 = vadd.f32 %v222_v6, %v221_v5 }
 0x14a   :  { %v226_v9 = vadd.f32 %v225_v7, %v223_v8 }
 0x14c   :  { %228 = vst.msk [vmem:[#allocation6] sm:$0x1] %vm227_vm2, %v226_v9 }
 0x14d   :  { %239 = dma.vmem_to_hbm [thread:$0]  %s235_s7, 16, %s237_s10, [#allocation5]  }
 0x14e   :  { %322 = dma.done.wait [#allocation5], 16  }
 0x14f   :  { %323 = vsyncadd [#allocation5], 4294967280 }
 0x150   :  { %244 = vsyncpa [#allocation4], 1 }
 0x151   :  { %245 = vsyncpa [#allocation5], 1 }

</bundles_post_ra>
